<compile_context>
chip_gen: v6e
topology: v6e:2x2x1
jax: 0.10.0
libtpu: 0.0.40
codegen_flags: <defaults>
</compile_context>

<pallas_src>
import math

import jax
import jax.numpy as jnp
from jax import lax
from jax.experimental import pallas as pl
from jax.experimental.pallas import tpu as pltpu

LN_EPS = 1e-5
INV_SQRT5 = 1.0 / math.sqrt(5.0)


def _round_up(x, m):
    return ((x + m - 1) // m) * m


def _layer_norm(x5, ln_w, ln_b):
    mean = jnp.mean(x5, axis=-1, keepdims=True)
    var = jnp.mean((x5 - mean) ** 2, axis=-1, keepdims=True)
    return ((x5 - mean) * lax.rsqrt(var + LN_EPS)) * ln_w + ln_b


def _make_kernel(tq, n_valid, n_pad):
    """Kernel for one (branch, q-tile) grid step. tq/n_valid/n_pad are static."""
    need_mask = n_pad > n_valid

    def kernel(x_ref, ln_w_ref, ln_b_ref, w_ref, out_ref):
        qi = pl.program_id(1)
        ln_w = ln_w_ref[...]                       # [1, 5]
        ln_b = ln_b_ref[...]                       # [1, 5]
        w = w_ref[0]                               # [24, 15] fused weight

        # ---- K / V over ALL (padded) rows --------------------------------
        # Cheap (N x 5 x 10 matmul); recomputed per q-tile so both grid axes
        # stay "parallel" (no persistent scratch dependency).
        x5_all = x_ref[0, :, 0:5]                  # [Np, 5]
        feat_all = _layer_norm(x5_all, ln_w, ln_b)
        kv = jnp.dot(feat_all, w[0:5, 0:10],
                     preferred_element_type=jnp.float32)   # [Np, 10]
        x_k = kv[:, 0:5]
        x_v = kv[:, 5:10]

        # ---- Q tile (this grid step's query rows) ------------------------
        row0 = pl.multiple_of(qi * tq, tq)
        xq = x_ref[0, pl.ds(row0, tq), :]          # [tq, 23]
        featq = _layer_norm(xq[:, 0:5], ln_w, ln_b)          # [tq, 5]
        x_ESG = jnp.where(xq[:, 5:14] <= 0.0, 1e-10, xq[:, 5:14])
        x_esg = jnp.where(xq[:, 14:23] <= 0.0, 1e-10, xq[:, 14:23])
        # z kept in registers (no VMEM scratch round-trip).
        zq = jnp.concatenate(
            [x_esg, x_ESG * x_esg, jnp.ones((tq, 1), jnp.float32)], axis=-1)
        # x_q already carries the 1/sqrt(5) scale (folded into w) and beta0
        # (via the ones column).
        x_q = jnp.dot(zq, w[5:24, 10:15],
                      preferred_element_type=jnp.float32)   # [tq, 5]

        # ---- scores + softmax_one + AV -----------------------------------
        scores = lax.dot_general(
            x_q.astype(jnp.bfloat16), x_k.astype(jnp.bfloat16),
            dimension_numbers=(((1,), (1,)), ((), ())),
            preferred_element_type=jnp.float32)             # [tq, Np]
        if need_mask:
            # Padded key rows must not affect the row max or the denominator.
            key_id = lax.broadcasted_iota(jnp.int32, scores.shape, 1)
            scores = jnp.where(key_id < n_valid, scores, jnp.float32(-1e30))

        scores = scores - jnp.max(scores, axis=1, keepdims=True)
        e = jnp.exp(scores)
        inv_denom = pl.reciprocal(1.0 + jnp.sum(e, axis=1, keepdims=True),
                                  approx=True)              # EUP slot
        attn = e * inv_denom

        x1 = jnp.dot(attn.astype(jnp.bfloat16), x_v.astype(jnp.bfloat16),
                     preferred_element_type=jnp.float32)    # [tq, 5]

        # residual path (args.ablation == False)
        out_ref[0] = x1 + featq
        # TODO(synk): for extremely large N (>~32k rows) also tile the key
        # axis with a flash-style online softmax, and emit a lane-dense
        # [2, 5, N] output layout.

    return kernel


def build_fused_params(params):
    """One-time host-side weight prep (transposes, casts, 1/sqrt(5) fold)."""
    def branch_weight(beta0, b1, b2):
        w = jnp.zeros((24, 15), jnp.float32)
        w = w.at[0:5, 0:5].set(params["w_k"].T.astype(jnp.float32))      # -> x_k
        w = w.at[0:5, 5:10].set(params["w_v"].T.astype(jnp.float32))     # -> x_v
        w = w.at[5:14, 10:15].set(b1.T.astype(jnp.float32) * INV_SQRT5)  # -> x_q (esg)
        w = w.at[14:23, 10:15].set(b2.T.astype(jnp.float32) * INV_SQRT5) # -> x_q (ESG*esg)
        w = w.at[23, 10:15].set(beta0.astype(jnp.float32)[0] * INV_SQRT5)  # -> +beta0
        return w

    w_fused = jnp.stack([
        branch_weight(params["beta_q10"], params["beta_q11"], params["beta_q12"]),
        branch_weight(params["beta_q20"], params["beta_q21"], params["beta_q22"]),
    ], axis=0)                                                           # [2, 24, 15]
    return {
        "w_fused": w_fused,
        "ln_w": params["ln_w"].reshape(1, 5).astype(jnp.float32),
        "ln_b": params["ln_b"].reshape(1, 5).astype(jnp.float32),
    }


@jax.jit
def esg_transform(fused, input_s, input_d):
    n = input_s.shape[0]
    # TODO(synk): if callers can provide a pre-stacked [2, N, 23] input, drop
    # this stack (it is an extra O(N*23) HBM read+write).
    x = jnp.stack([input_s, input_d], axis=0).astype(jnp.float32)        # [2, N, 23]

    # Tile selection: q-tile <= 256 rows; rows padded to a tile multiple.
    np8 = _round_up(max(n, 1), 8)
    if np8 <= 256:
        tq, n_pad = np8, np8
    else:
        tq = 256
        n_pad = _round_up(n, tq)
    if n_pad != n:
        x = jnp.pad(x, ((0, 0), (0, n_pad - n), (0, 0)))
    nt = n_pad // tq

    # VMEM budget for the actual live set (x block x2 bufs, score/exp tiles,
    # K/V, q-tile temporaries) + slack; keeps the compiler from spilling at
    # moderate N instead of relying on the 16/32 MiB default scoped limit.
    score_tile_bytes = tq * n_pad * 4
    x_block_bytes = n_pad * 23 * 4
    vmem_bytes = (2 * x_block_bytes
                  + 5 * score_tile_bytes
                  + 3 * n_pad * 16 * 4
                  + 8 * tq * 32 * 4
                  + (2 << 20))
    vmem_limit = int(max(32 << 20, min(vmem_bytes, 100 << 20)))

    flops = int(2 * (2 * 2 * n_pad * n_pad * 5          # QK^T + attn@V
                     + 2 * n_pad * 5 * 10 * nt          # K/V matmul (recomputed)
                     + 2 * tq * 19 * 5 * nt))           # Q matmul
    transcendentals = int(2 * n_pad * n_pad + 4 * n_pad)
    bytes_accessed = int(2 * n_pad * 23 * 4 + 2 * n_pad * 5 * 4 + 2 * 24 * 15 * 4)

    kernel = _make_kernel(tq, n, n_pad)
    out = pl.pallas_call(
        kernel,
        out_shape=jax.ShapeDtypeStruct((2, n_pad, 5), jnp.float32),
        grid=(2, nt),
        in_specs=[
            pl.BlockSpec((1, n_pad, 23), lambda b, q: (b, 0, 0)),  # per-branch full x
            pl.BlockSpec((1, 5), lambda b, q: (0, 0)),             # shared LN weight
            pl.BlockSpec((1, 5), lambda b, q: (0, 0)),             # shared LN bias
            pl.BlockSpec((1, 24, 15), lambda b, q: (b, 0, 0)),     # per-branch fused W
        ],
        out_specs=pl.BlockSpec((1, tq, 5), lambda b, q: (b, q, 0)),
        compiler_params=pltpu.CompilerParams(
            dimension_semantics=("parallel", "parallel"),
            vmem_limit_bytes=vmem_limit),
        cost_estimate=pl.CostEstimate(
            flops=flops, transcendentals=transcendentals,
            bytes_accessed=bytes_accessed),
    )(x, fused["ln_w"], fused["ln_b"], fused["w_fused"])
    return out[0, :n], out[1, :n]


# ----------------------------- reference & demo -----------------------------

def esg_reference(params, input_s, input_d):
    """Pure-JAX f32 reference matching the PyTorch module (ablation=False)."""
    def ln(x):
        mean = jnp.mean(x, -1, keepdims=True)
        var = jnp.mean((x - mean) ** 2, -1, keepdims=True)
        return (x - mean) / jnp.sqrt(var + LN_EPS) * params["ln_w"] + params["ln_b"]

    def branch(x, b0, b1, b2):
        x_ESG = jnp.where(x[:, 5:14] <= 0, 1e-10, x[:, 5:14])
        x_esg = jnp.where(x[:, 14:] <= 0, 1e-10, x[:, 14:])
        feat = ln(x[:, 0:5])
        x_k = feat @ params["w_k"].T
        x_v = feat @ params["w_v"].T
        x_q = b0 + x_esg @ b1.T + (x_ESG * x_esg) @ b2.T
        s = (x_q @ x_k.T) / math.sqrt(5.0)
        s = s - jnp.max(s, axis=1, keepdims=True)
        e = jnp.exp(s)
        attn = e / (1.0 + jnp.sum(e, axis=1, keepdims=True))
        return attn @ x_v + feat

    xs = branch(input_s, params["beta_q10"], params["beta_q11"], params["beta_q12"])
    xd = branch(input_d, params["beta_q20"], params["beta_q21"], params["beta_q22"])
    return xs, xd


def xavier_normal(key, shape):
    fan_out, fan_in = shape
    std = math.sqrt(2.0 / (fan_in + fan_out))
    return jax.random.normal(key, shape, dtype=jnp.float32) * std


if __name__ == "__main__":
    key = jax.random.PRNGKey(0)
    keys = jax.random.split(key, 10)

    params = {
        "beta_q10": jnp.zeros((1,), jnp.float32),
        "beta_q11": xavier_normal(keys[2], (5, 9)),
        "beta_q12": xavier_normal(keys[3], (5, 9)),
        "beta_q20": jnp.zeros((1,), jnp.float32),
        "beta_q21": xavier_normal(keys[4], (5, 9)),
        "beta_q22": xavier_normal(keys[5], (5, 9)),
        "w_k": xavier_normal(keys[6], (5, 5)),
        "w_v": xavier_normal(keys[7], (5, 5)),
        # LayerNorm is not touched by init_weights -> default ones/zeros
        "ln_w": jnp.ones((5,), jnp.float32),
        "ln_b": jnp.zeros((5,), jnp.float32),
    }
    fused = build_fused_params(params)   # one-time weight fusion / transpose / cast

    ok = True
    for N, (ks, kd) in ((8, (keys[0], keys[1])), (12, (keys[8], keys[9]))):
        input_s = jax.random.normal(ks, (N, 23), dtype=jnp.float32)
        input_d = jax.random.normal(kd, (N, 23), dtype=jnp.float32)

        x_s0, x_d0 = esg_transform(fused, input_s, input_d)
        jax.block_until_ready((x_s0, x_d0))
        assert x_s0.shape == (N, 5) and x_d0.shape == (N, 5)

        ref_s, ref_d = esg_reference(params, input_s, input_d)
        err = max(float(jnp.max(jnp.abs(x_s0 - ref_s))),
                  float(jnp.max(jnp.abs(x_d0 - ref_d))))
        ok = ok and math.isfinite(err) and err < 0.1

    assert ok, "kernel output diverged from reference"
    print("KERNEL_OK")
</pallas_src>

<mosaic_0001>
module attributes {stable_mosaic.version = 11 : i64} {
  func.func @kernel(%arg0: i32, %arg1: i32, %arg2: memref<1x8x23xf32, #tpu.memory_space<vmem>>, %arg3: memref<1x5xf32, #tpu.memory_space<vmem>>, %arg4: memref<1x5xf32, #tpu.memory_space<vmem>>, %arg5: memref<1x24x15xf32, #tpu.memory_space<vmem>>, %arg6: memref<1x8x5xf32, #tpu.memory_space<vmem>>) attributes {dimension_semantics = [#tpu.dimension_semantics<parallel>, #tpu.dimension_semantics<parallel>], iteration_bounds = array<i64: 2, 1>, scalar_prefetch = 0 : i64, scratch_operands = 0 : i64, tpu.core_type = #tpu.core_type<tc>, window_params = [{transform_indices = @transform_0, window_bounds = array<i64: 1, 8, 23>}, {pipeline_mode = #tpu.pipeline_mode<synchronous>, transform_indices = @transform_1, window_bounds = array<i64: 1, 5>}, {pipeline_mode = #tpu.pipeline_mode<synchronous>, transform_indices = @transform_2, window_bounds = array<i64: 1, 5>}, {transform_indices = @transform_3, window_bounds = array<i64: 1, 24, 15>}, {transform_indices = @transform_4, window_bounds = array<i64: 1, 8, 5>}]} {
    %c0 = arith.constant 0 : index
    %c0_0 = arith.constant 0 : index
    %0 = vector.load %arg3[%c0, %c0_0] : memref<1x5xf32, #tpu.memory_space<vmem>>, vector<1x5xf32>
    %c0_1 = arith.constant 0 : index
    %c0_2 = arith.constant 0 : index
    %1 = vector.load %arg4[%c0_1, %c0_2] : memref<1x5xf32, #tpu.memory_space<vmem>>, vector<1x5xf32>
    %c0_3 = arith.constant 0 : index
    %c0_4 = arith.constant 0 : index
    %c0_5 = arith.constant 0 : index
    %2 = vector.load %arg5[%c0_3, %c0_4, %c0_5] : memref<1x24x15xf32, #tpu.memory_space<vmem>>, vector<1x24x15xf32>
    %3 = vector.shape_cast %2 : vector<1x24x15xf32> to vector<24x15xf32>
    %c0_6 = arith.constant 0 : index
    %c0_7 = arith.constant 0 : index
    %c0_8 = arith.constant 0 : index
    %4 = vector.load %arg2[%c0_6, %c0_7, %c0_8] : memref<1x8x23xf32, #tpu.memory_space<vmem>>, vector<1x8x5xf32>
    %5 = vector.shape_cast %4 : vector<1x8x5xf32> to vector<8x5xf32>
    %cst = arith.constant dense<0.000000e+00> : vector<8xf32>
    %6 = vector.multi_reduction <add>, %5, %cst [1] : vector<8x5xf32> to vector<8xf32>
    %7 = vector.shape_cast %6 : vector<8xf32> to vector<8x1xf32>
    %cst_9 = arith.constant 5.000000e+00 : f32
    %8 = vector.broadcast %cst_9 : f32 to vector<8x1xf32>
    %9 = arith.divf %7, %8 : vector<8x1xf32>
    %10 = vector.broadcast %9 : vector<8x1xf32> to vector<8x5xf32>
    %11 = arith.subf %5, %10 : vector<8x5xf32>
    %12 = arith.mulf %11, %11 : vector<8x5xf32>
    %cst_10 = arith.constant dense<0.000000e+00> : vector<8xf32>
    %13 = vector.multi_reduction <add>, %12, %cst_10 [1] : vector<8x5xf32> to vector<8xf32>
    %14 = vector.shape_cast %13 : vector<8xf32> to vector<8x1xf32>
    %cst_11 = arith.constant 5.000000e+00 : f32
    %15 = vector.broadcast %cst_11 : f32 to vector<8x1xf32>
    %16 = arith.divf %14, %15 : vector<8x1xf32>
    %17 = vector.broadcast %9 : vector<8x1xf32> to vector<8x5xf32>
    %18 = arith.subf %5, %17 : vector<8x5xf32>
    %cst_12 = arith.constant 9.99999974E-6 : f32
    %19 = vector.broadcast %cst_12 : f32 to vector<8x1xf32>
    %20 = arith.addf %16, %19 : vector<8x1xf32>
    %21 = math.rsqrt %20 : vector<8x1xf32>
    %22 = vector.broadcast %21 : vector<8x1xf32> to vector<8x5xf32>
    %23 = arith.mulf %18, %22 : vector<8x5xf32>
    %24 = vector.broadcast %0 : vector<1x5xf32> to vector<8x5xf32>
    %25 = arith.mulf %23, %24 : vector<8x5xf32>
    %26 = vector.broadcast %1 : vector<1x5xf32> to vector<8x5xf32>
    %27 = arith.addf %25, %26 : vector<8x5xf32>
    %28 = vector.extract_strided_slice %3 {offsets = [0, 0], sizes = [5, 10], strides = [1, 1]} : vector<24x15xf32> to vector<5x10xf32>
    %cst_13 = arith.constant dense<0.000000e+00> : vector<8x10xf32>
    %29 = tpu.matmul %27, %28, %cst_13 {dimension_numbers = #tpu.dot_dimension_numbers<[1], [0], [0], [1], [0, 0, 1, 1], [], []>} : vector<8x5xf32>, vector<5x10xf32>, vector<8x10xf32> -> vector<8x10xf32>
    %30 = vector.extract_strided_slice %29 {offsets = [0, 0], sizes = [8, 5], strides = [1, 1]} : vector<8x10xf32> to vector<8x5xf32>
    %31 = vector.extract_strided_slice %29 {offsets = [0, 5], sizes = [8, 5], strides = [1, 1]} : vector<8x10xf32> to vector<8x5xf32>
    %c8_i32 = arith.constant 8 : i32
    %32 = arith.muli %arg1, %c8_i32 : i32
    %33 = tpu.assume_multiple %32, 8 : i32
    %c0_14 = arith.constant 0 : index
    %34 = arith.index_cast %33 : i32 to index
    %c0_15 = arith.constant 0 : index
    %35 = vector.load %arg2[%c0_14, %34, %c0_15] : memref<1x8x23xf32, #tpu.memory_space<vmem>>, vector<1x8x23xf32>
    %36 = vector.shape_cast %35 : vector<1x8x23xf32> to vector<8x23xf32>
    %37 = vector.extract_strided_slice %36 {offsets = [0, 0], sizes = [8, 5], strides = [1, 1]} : vector<8x23xf32> to vector<8x5xf32>
    %cst_16 = arith.constant dense<0.000000e+00> : vector<8xf32>
    %38 = vector.multi_reduction <add>, %37, %cst_16 [1] : vector<8x5xf32> to vector<8xf32>
    %39 = vector.shape_cast %38 : vector<8xf32> to vector<8x1xf32>
    %cst_17 = arith.constant 5.000000e+00 : f32
    %40 = vector.broadcast %cst_17 : f32 to vector<8x1xf32>
    %41 = arith.divf %39, %40 : vector<8x1xf32>
    %42 = vector.broadcast %41 : vector<8x1xf32> to vector<8x5xf32>
    %43 = arith.subf %37, %42 : vector<8x5xf32>
    %44 = arith.mulf %43, %43 : vector<8x5xf32>
    %cst_18 = arith.constant dense<0.000000e+00> : vector<8xf32>
    %45 = vector.multi_reduction <add>, %44, %cst_18 [1] : vector<8x5xf32> to vector<8xf32>
    %46 = vector.shape_cast %45 : vector<8xf32> to vector<8x1xf32>
    %cst_19 = arith.constant 5.000000e+00 : f32
    %47 = vector.broadcast %cst_19 : f32 to vector<8x1xf32>
    %48 = arith.divf %46, %47 : vector<8x1xf32>
    %49 = vector.broadcast %41 : vector<8x1xf32> to vector<8x5xf32>
    %50 = arith.subf %37, %49 : vector<8x5xf32>
    %cst_20 = arith.constant 9.99999974E-6 : f32
    %51 = vector.broadcast %cst_20 : f32 to vector<8x1xf32>
    %52 = arith.addf %48, %51 : vector<8x1xf32>
    %53 = math.rsqrt %52 : vector<8x1xf32>
    %54 = vector.broadcast %53 : vector<8x1xf32> to vector<8x5xf32>
    %55 = arith.mulf %50, %54 : vector<8x5xf32>
    %56 = vector.broadcast %0 : vector<1x5xf32> to vector<8x5xf32>
    %57 = arith.mulf %55, %56 : vector<8x5xf32>
    %58 = vector.broadcast %1 : vector<1x5xf32> to vector<8x5xf32>
    %59 = arith.addf %57, %58 : vector<8x5xf32>
    %60 = vector.extract_strided_slice %36 {offsets = [0, 5], sizes = [8, 9], strides = [1, 1]} : vector<8x23xf32> to vector<8x9xf32>
    %cst_21 = arith.constant 0.000000e+00 : f32
    %61 = vector.broadcast %cst_21 : f32 to vector<8x9xf32>
    %62 = arith.cmpf ole, %60, %61 : vector<8x9xf32>
    %63 = vector.extract_strided_slice %36 {offsets = [0, 5], sizes = [8, 9], strides = [1, 1]} : vector<8x23xf32> to vector<8x9xf32>
    %cst_22 = arith.constant 1.000000e-10 : f32
    %64 = vector.broadcast %cst_22 : f32 to vector<8x9xf32>
    %65 = arith.select %62, %64, %63 : vector<8x9xi1>, vector<8x9xf32>
    %66 = vector.extract_strided_slice %36 {offsets = [0, 14], sizes = [8, 9], strides = [1, 1]} : vector<8x23xf32> to vector<8x9xf32>
    %cst_23 = arith.constant 0.000000e+00 : f32
    %67 = vector.broadcast %cst_23 : f32 to vector<8x9xf32>
    %68 = arith.cmpf ole, %66, %67 : vector<8x9xf32>
    %69 = vector.extract_strided_slice %36 {offsets = [0, 14], sizes = [8, 9], strides = [1, 1]} : vector<8x23xf32> to vector<8x9xf32>
    %cst_24 = arith.constant 1.000000e-10 : f32
    %70 = vector.broadcast %cst_24 : f32 to vector<8x9xf32>
    %71 = arith.select %68, %70, %69 : vector<8x9xi1>, vector<8x9xf32>
    %72 = arith.mulf %65, %71 : vector<8x9xf32>
    %cst_25 = arith.constant 1.000000e+00 : f32
    %73 = vector.broadcast %cst_25 : f32 to vector<8x1xf32>
    %74 = tpu.concatenate %71, %72, %73 in 1 : vector<8x9xf32>, vector<8x9xf32>, vector<8x1xf32> -> vector<8x19xf32>
    %75 = vector.extract_strided_slice %3 {offsets = [5, 10], sizes = [19, 5], strides = [1, 1]} : vector<24x15xf32> to vector<19x5xf32>
    %cst_26 = arith.constant dense<0.000000e+00> : vector<8x5xf32>
    %76 = tpu.matmul %74, %75, %cst_26 {dimension_numbers = #tpu.dot_dimension_numbers<[1], [0], [0], [1], [0, 0, 1, 1], [], []>} : vector<8x19xf32>, vector<19x5xf32>, vector<8x5xf32> -> vector<8x5xf32>
    %77 = arith.truncf %76 : vector<8x5xf32> to vector<8x5xbf16>
    %78 = arith.truncf %30 : vector<8x5xf32> to vector<8x5xbf16>
    %cst_27 = arith.constant dense<0.000000e+00> : vector<8x8xf32>
    %79 = tpu.matmul %77, %78, %cst_27 {dimension_numbers = #tpu.dot_dimension_numbers<[1], [1], [0], [0], [0, 0, 1, 0], [], []>} : vector<8x5xbf16>, vector<8x5xbf16>, vector<8x8xf32> -> vector<8x8xf32>
    %cst_28 = arith.constant dense<0xFF800000> : vector<8xf32>
    %80 = vector.multi_reduction <maximumf>, %79, %cst_28 [1] : vector<8x8xf32> to vector<8xf32>
    %81 = vector.shape_cast %80 : vector<8xf32> to vector<8x1xf32>
    %82 = vector.broadcast %81 : vector<8x1xf32> to vector<8x8xf32>
    %83 = arith.subf %79, %82 : vector<8x8xf32>
    %84 = math.exp %83 : vector<8x8xf32>
    %cst_29 = arith.constant dense<0.000000e+00> : vector<8xf32>
    %85 = vector.multi_reduction <add>, %84, %cst_29 [1] : vector<8x8xf32> to vector<8xf32>
    %86 = vector.shape_cast %85 : vector<8xf32> to vector<8x1xf32>
    %cst_30 = arith.constant 1.000000e+00 : f32
    %87 = vector.broadcast %cst_30 : f32 to vector<8x1xf32>
    %88 = arith.addf %87, %86 : vector<8x1xf32>
    %89 = tpu.reciprocal %88 {approx = true} : vector<8x1xf32> -> vector<8x1xf32>
    %90 = vector.broadcast %89 : vector<8x1xf32> to vector<8x8xf32>
    %91 = arith.mulf %84, %90 : vector<8x8xf32>
    %92 = arith.truncf %91 : vector<8x8xf32> to vector<8x8xbf16>
    %93 = arith.truncf %31 : vector<8x5xf32> to vector<8x5xbf16>
    %cst_31 = arith.constant dense<0.000000e+00> : vector<8x5xf32>
    %94 = tpu.matmul %92, %93, %cst_31 {dimension_numbers = #tpu.dot_dimension_numbers<[1], [0], [0], [1], [0, 0, 1, 1], [], []>} : vector<8x8xbf16>, vector<8x5xbf16>, vector<8x5xf32> -> vector<8x5xf32>
    %95 = arith.addf %94, %59 : vector<8x5xf32>
    %c0_32 = arith.constant 0 : index
    %c0_33 = arith.constant 0 : index
    %c0_34 = arith.constant 0 : index
    %96 = vector.load %arg6[%c0_32, %c0_33, %c0_34] : memref<1x8x5xf32, #tpu.memory_space<vmem>>, vector<1x8x5xf32>
    %97 = vector.shape_cast %96 : vector<1x8x5xf32> to vector<8x5xf32>
    %98 = vector.shape_cast %95 : vector<8x5xf32> to vector<1x8x5xf32>
    tpu.vector_store %arg6[%c0_32, %c0_33, %c0_34], %98 {strides = array<i32>} : memref<1x8x5xf32, #tpu.memory_space<vmem>>, vector<1x8x5xf32>,
    return
  }
  func.func @transform_0(%arg0: i32, %arg1: i32) -> (i32, i32, i32) {
    %c0_i32 = arith.constant 0 : i32
    %c0_i32_0 = arith.constant 0 : i32
    %c0_i32_1 = arith.constant 0 : i32
    return %arg0, %c0_i32, %c0_i32_0 : i32, i32, i32
  }
  func.func @transform_1(%arg0: i32, %arg1: i32) -> (i32, i32) {
    %c0_i32 = arith.constant 0 : i32
    %c0_i32_0 = arith.constant 0 : i32
    %c0_i32_1 = arith.constant 0 : i32
    return %c0_i32, %c0_i32_0 : i32, i32
  }
  func.func @transform_2(%arg0: i32, %arg1: i32) -> (i32, i32) {
    %c0_i32 = arith.constant 0 : i32
    %c0_i32_0 = arith.constant 0 : i32
    %c0_i32_1 = arith.constant 0 : i32
    return %c0_i32, %c0_i32_0 : i32, i32
  }
  func.func @transform_3(%arg0: i32, %arg1: i32) -> (i32, i32, i32) {
    %c0_i32 = arith.constant 0 : i32
    %c0_i32_0 = arith.constant 0 : i32
    %c0_i32_1 = arith.constant 0 : i32
    return %arg0, %c0_i32, %c0_i32_0 : i32, i32, i32
  }
  func.func @transform_4(%arg0: i32, %arg1: i32) -> (i32, i32, i32) {
    %c0_i32 = arith.constant 0 : i32
    %c0_i32_0 = arith.constant 0 : i32
    return %arg0, %arg1, %c0_i32 : i32, i32, i32
  }
}

</mosaic_0001>

<bundles_post_ra>
// kernel: esg_transform.1
= control target key start
LH: loop header
LB: loop body
LE: loop exit
PB: predicated region body
PF: predicated region fallthrough
CT: control target
= control target key end

     0   :  { %s822_s15 = smov 0   ;;  %s824_s16 = smov 0   ;;  %s908_s0 = inlined_call_operand.vmem [shape: f32[2,8,23], index: 0, kind: input, shape index: {}]   ;;  %s909_s1 = inlined_call_operand.vmem [shape: f32[1,5], index: 1, kind: input, shape index: {}]   ;;  %s910_s2 = inlined_call_operand.vmem [shape: f32[1,5], index: 2, kind: input, shape index: {}]   ;;  %s911_s3 = inlined_call_operand.vmem [shape: f32[2,24,15], index: 3, kind: input, shape index: {}]   ;;  %s912_s4 = inlined_call_operand.vmem [shape: f32[2,8,5], index: 4, kind: output, shape index: {}]  }
   0x1   :  { %s826_s17 = smov 0  }
   0x2 LB: > { %s26_s18 = sadd.s32 1, %s784_s16  ;;  %p676_p0 = scmp.ge.s32.totalorder %s788_s17, 1  ;;  %s788_s17 = sphi %s826_s17, %s14_s17   ;;  %s784_s16 = sphi %s824_s16, %s914_s16   ;;  %s780_s15 = sphi %s822_s15, %s913_s15  }
   0x3   : > { %p28_p1 = scmp.ge.s32.totalorder %s26_s18, 2  ;;  %p185_p2 = scmp.lt.s32.totalorder %s788_s17, 3 }
   0x5   : > { %s916_s18 = smov (%p28_p1, %s26_s18), 0  ;;  %p186_p3 = pnand %p676_p0, %p185_p2 }
   0x6   : > { %p217_p4 = scmp.lt.s32.totalorder (!%p186_p3), %s780_s15, 1  ;;  %s790_s27 = smov (!%p186_p3), 118  }
   0x7   : > { %189 = sbr.rel (%p186_p3) target bundleno = 1235 (0x4d3), region = 36  ;;  %s791_s28 = smov (!%p186_p3), 119  }
   0x8   : > { %s793_s29 = smov (!%p186_p3), 4   ;;  %s795_s30 = smov (!%p186_p3), 114  }
   0x9   : > { %s796_s9 = smov (!%p186_p3), 123  }
   0xc   : > { %s918_s15 = smov (!%p217_p4, %s780_s15), 1  ;;  %vm240_vm0 = vcmask 39936   ;;  %vm384_vm2 = vcmask 1042432   ;;  %v792_v8 = vmov 0.0   ;;  %vm272_vm3 = vcmask 1044480  }
   0xd   : > { %s677_s19 = sshll.u32 %s918_s15, 3  ;;  %s726_s20 = smul.u32 24, %s918_s15  ;;  %705 = vmatprep.subr.mxu1 %v792_v8  ;;  %700 = vmatprep.subr.mxu0 %v792_v8  ;;  %vm794_vm4 = vmmov 0   ;;  %vm378_vm5 = vcmask 72704   ;;  %vm380_vm6 = vcmask 146432   ;;  %vm398_vm7 = vcmask 154624  }
   0xe   : > { %s220_s23 = scalar_lea.vmem %s908_s0, %s677_s19  ;;  %702 = vmatprep.mubr.msk.f32.mxu0 %vm794_vm4, %v792_v8  ;;  %711 = vmatprep.mubr.msk.f32.mxu1 %vm794_vm4, %v792_v8  ;;  %v680_v30 = vld [vmem:[%s909_s1] ss:$0 sm:$0xff]  ;;  %vm522_vm8 = vcmask 64512   ;;  %vm542_vm9 = vcmask 1043456   ;;  %s232_s12 = scalar_lea.vmem %s912_s4, %s677_s19 }
   0xf   : > { %v849_v0 = vld [vmem:[%s220_s23] sm:$0xff]  ;;  %s854_s26 = scalar_lea.vmem %s911_s3, %s726_s20 }
  0x10   : > { %v858_v1 = vsel %vm240_vm0, %v849_v0, 0.0  ;;  %v238_v2 = vld [vmem:[%s854_s26 + $0x10] sm:$0xff]  ;;  %v237_v4 = vld [vmem:[%s854_s26 + $0x8] sm:$0xff]  ;;  %vm364_vm1 = vcmp.le.f32.partialorder %v849_v0, 0.0  ;;  %v236_v17 = vld [vmem:[%s854_s26] sm:$0xff] }
  0x11   : > { %242 = vadd.xlane.f32.xlu0 %v858_v1  ;;  %v388_v3 = vrot.slane %v238_v2, 5  ;;  %v386_v5 = vrot.slane %v237_v4, 5  ;;  %v365_v6 = vsel %vm364_vm1, 1e-10, %v849_v0  ;;  %v385_v18 = vrot.slane %v236_v17, 5  ;;  %701 = vmatpush3.msk.msra.mxu0 %vm272_vm3, %v236_v17 }
  0x12   : > { %714 = vmatprep.subr.bf16.mxu0 %v792_v8  ;;  %v681_v32 = vld [vmem:[%s910_s2] ss:$0 sm:$0xff] }
  0x13   : > { %394 = vrot.lane.b32.xlu1 %v388_v3, %s790_s27  ;;  %v389_v7 = vsel %vm384_vm2, %v386_v5, %v388_v3  ;;  %v387_v19 = vsel %vm384_vm2, %v385_v18, %v386_v5 }
  0x27   : > { %367 = vrot.lane.b32.xlu0 %v365_v6, %s791_s28 }
  0x85   : > { %v395_v9 = vpop.permute.xlu1 %394 }
  0x86   : > { %706 = vmatpush3.msk.msra.mxu1 %vm384_vm2, %v395_v9 }
  0x87   : > { %707 = vmatprep.subr.mxu1 %v792_v8 }
  0x9a   : > { %v243_v10 = vpop.xlane.xlu0 %242 }
  0x9b   : > { %v245_v11 = vmul.f32 0.2, %v243_v10 }
  0x9d   : > { %v246_v12 = vsub.f32 %v849_v0, %v245_v11 }
  0x9e   : > { %v368_v13 = vpop.permute.xlu0 %367 }
  0x9f   : > { %v247_v14 = vmul.f32 %v246_v12, %v246_v12  ;;  %v370_v15 = vmul.f32 %v368_v13, %v365_v6 }
  0xa1   : > { %v248_v16 = vsel %vm240_vm0, %v247_v14, 0.0  ;;  %375 = vrot.lane.b32.xlu0 %v370_v15, %s793_s29 }
  0xa2   : > { %249 = vadd.xlane.f32.xlu1 %v248_v16 }
  0xb3   : > { %392 = vrot.lane.b32.xlu1 %v389_v7, %s790_s27 }
  0xb7   : > { %371 = vrot.lane.b32.xlu1 %v365_v6, %s795_s30 }
  0xbb   : > { %390 = vrot.lane.b32.xlu1 %v387_v19, %s790_s27 }
 0x113   : > { %v376_v24 = vpop.permute.xlu0 %375 }
 0x12b   : > { %v250_v20 = vpop.xlane.xlu1 %249 }
 0x12c   : > { %v251_v21 = vmul.f32 0.2, %v250_v20 }
 0x12e   : > { %v252_v22 = vadd.f32 1e-05, %v251_v21 }
 0x12f   : > { %v393_v23 = vpop.permute.xlu1 %392 }
 0x130   : > { %758 = vrsqrt.f32 %v252_v22  ;;  %708 = vmatpush3.msra.mxu1 %v393_v23 }
 0x131   : > { %709 = vmatprep.subr.mxu1 %v792_v8 }
 0x133   : > { %v372_v25 = vpop.permute.xlu1 %371 }
 0x134   : > { %v379_v26 = vsel %vm378_vm5, %v372_v25, %v376_v24 }
 0x135   : > { %v381_v27 = vsel %vm380_vm6, %v379_v26, 1.0 }
 0x137   : > { %v391_v28 = vpop.permute.xlu1 %390 }
 0x138   : > { %710 = vmatpush3.msra.mxu1 %v391_v28 }
 0x139   : > { %712 = vmatmul.mubr.msk.f32.vlgmr.msra.gmra.mxu1 %vm398_vm7, %v381_v27  ;;  %720 = vmatprep.subr.bf16.mxu1 %v792_v8 }
 0x13a   : > { %722 = vmatprep.mubr.msk.bf16.mxu1 %vm794_vm4, %v792_v8 }
 0x13d   : > { %v759_v29 = vpop.eup %758 }
 0x13e   : > { %v254_v31 = vmul.f32 %v759_v29, %v246_v12 }
 0x140   : > { %v261_v33 = vmul.f32 %v680_v30, %v254_v31 }
 0x142   : > { %v268_v34 = vadd.f32 %v681_v32, %v261_v33 }
 0x144   : > { %703 = vmatmul.mubr.msk.f32.vlgmr.msra.gmra.mxu0 %vm240_vm0, %v268_v34 }
 0x145   : > { %716 = vmatprep.mubr.msk.bf16.mxu0 %vm794_vm4, %v792_v8 }
 0x1f9   : > { %v470_v35 = vpop.f32.mrf.mxu1 }
 0x1fa   : > { %v474_v41 = vpack.c.bf16 %v470_v35, %v470_v35 }
 0x1fb   : > { %v713_v36 = vpop.f32.mrf.mxu1 }
 0x204   : > { %v342_v37 = vpop.f32.mrf.mxu0 }
 0x205   : > { %v475_v38 = vpack.c.bf16 %v342_v37, %v342_v37 }
 0x206   : > { %v704_v39 = vpop.f32.mrf.mxu0 }
 0x207   : > { %v480_v40 = vsel %vm240_vm0, %v475_v38, 0 }
 0x208   : > { %715 = vmatpush3.bf16.xpose.msra.mxu0 %v480_v40 }
 0x20f   : > { %717 = vmatmul.mubr.msk.bf16.vlgmr.msra.gmra.mxu0 %vm240_vm0, %v474_v41 }
 0x2cf   : > { %v516_v42 = vpop.f32.mrf.mxu0 }
 0x2d0   : > { %v523_v43 = vsel %vm522_vm8, %v516_v42, -inf }
 0x2d1   : > { %524 = vmax.xlane.f32.xlu0 %v523_v43  ;;  %v718_v44 = vpop.f32.mrf.mxu0 }
 0x2d3   : > { %v519_v45 = vpop.f32.mrf.mxu0 }
 0x2d5   : > { %v719_v46 = vpop.f32.mrf.mxu0 }
 0x2e7   : > { %537 = vrot.lane.b32.xlu0 %v475_v38, %s796_s9 }
 0x35a   : > { %v525_v47 = vpop.xlane.xlu0 %524 }
 0x35b   : > { %v526_v48 = vsub.f32 %v516_v42, %v525_v47 }
 0x35d   : > { %v527_v49 = vmul.f32 1.442695, %v526_v48 }
 0x35e   : > { %v538_v50 = vpop.permute.xlu0 %537 }
 0x35f   : > { %760 = vpow2.f32 %v527_v49  ;;  %v544_v51 = vsel %vm542_vm9, %v538_v50, 0 }
 0x360   : > { %721 = vmatpush3.bf16.msra.mxu1 %v544_v51 }
 0x36c   : > { %v761_v52 = vpop.eup %760 }
 0x36d   : > { %v529_v53 = vsel %vm522_vm8, %v761_v52, 0.0 }
 0x36e   : > { %530 = vadd.xlane.f32.xlu1 %v529_v53 }
 0x372   : > { %350 = vadd.xlane.f32.xlu1 %v858_v1 }
 0x3f7   : > { %v531_v54 = vpop.xlane.xlu1 %530 }
 0x3f8   : > { %v532_v55 = vadd.f32 1.0, %v531_v54 }
 0x3fa   : > { %762 = vrcp.f32 %v532_v55 }
 0x3fb   : > { %v351_v56 = vpop.xlane.xlu1 %350 }
 0x3fc   : > { %v352_v57 = vmul.f32 0.2, %v351_v56 }
 0x3fe   : > { %v353_v58 = vsub.f32 %v849_v0, %v352_v57 }
 0x400   : > { %v354_v59 = vmul.f32 %v353_v58, %v353_v58 }
 0x402   : > { %v355_v60 = vsel %vm240_vm0, %v354_v59, 0.0 }
 0x403   : > { %356 = vadd.xlane.f32.xlu1 %v355_v60 }
 0x407   : > { %v763_v61 = vpop.eup %762 }
 0x408   : > { %v534_v62 = vmul.f32 %v763_v61, %v761_v52 }
 0x40a   : > { %v535_v63 = vpack.c.bf16 %v534_v62, %v534_v62 }
 0x40c   : > { %723 = vmatmul.mubr.msk.bf16.vlgmr.msra.gmra.mxu1 %vm522_vm8, %v535_v63 }
 0x48c   : > { %v357_v2 = vpop.xlane.xlu1 %356 }
 0x48d   : > { %v358_v3 = vmul.f32 0.2, %v357_v2 }
 0x48f   : > { %v359_v1 = vadd.f32 1e-05, %v358_v3 }
 0x491   : > { %764 = vrsqrt.f32 %v359_v1 }
 0x49e   : > { %v765_v4 = vpop.eup %764 }
 0x49f   : > { %v361_v5 = vmul.f32 %v765_v4, %v353_v58 }
 0x4a1   : > { %v362_v6 = vmul.f32 %v680_v30, %v361_v5 }
 0x4a3   : > { %v363_v7 = vadd.f32 %v681_v32, %v362_v6 }
 0x4cc   : > { %v580_v0 = vpop.f32.mrf.mxu1 }
 0x4cd   : > { %v581_v8 = vadd.f32 %v580_v0, %v363_v7 }
 0x4ce   : > { %v724_v9 = vpop.f32.mrf.mxu1 }
 0x4cf   : > { %586 = vst.msk [vmem:[%s232_s12] sm:$0xff] %vm240_vm0, %v581_v8 }
 0x4d0   : > { %v583_v10 = vpop.f32.mrf.mxu1 }
 0x4d2   : > { %v725_v11 = vpop.f32.mrf.mxu1 }
 0x4d3 PF: > { %s14_s17 = sadd.s32 1, %s788_s17   ;;  %s913_s15 = smov %s784_s16 }
 0x4d4   : > { %p11_p5 = scmp.ge.s32.totalorder %s14_s17, 4   ;;  %s914_s16 = smov %s916_s18 }
 0x4d6   :  { %13 = sbr.rel (!%p11_p5) target bundleno = 2 (0x2), region = 70 }

</bundles_post_ra>
